<compile_context>
chip_gen: v5e
topology: v5e:2x2
jax: 0.10.0
libtpu: 0.0.40
codegen_flags: <defaults>
</compile_context>

<pallas_src>
import numpy as np
import jax
import jax.numpy as jnp
from jax.experimental import pallas as pl
from jax.experimental.pallas import tpu as pltpu


# ----------------------------------------------------------------------------
# helpers
# ----------------------------------------------------------------------------
def _sublane(dtype) -> int:
    # second-minor tile multiple: 8 for 4-byte, 16 for 2-byte, 32 for 1-byte.
    return max(8, 32 // np.dtype(dtype).itemsize)


def _element_indices(n: int, factor: int, order: np.ndarray) -> np.ndarray:
    """Element-level gather indices realizing the patch permutation."""
    p = n // factor
    return np.concatenate(
        [np.arange(o * p, (o + 1) * p) for o in order]).astype(np.int32)


def _largest_divisor_within(b: int, bytes_per_b: int, budget: int) -> int:
    for tb in range(b, 0, -1):
        if b % tb == 0 and tb * bytes_per_b <= budget:
            return tb
    return 1


def _pick_tb_mm(b: int, h: int, sub: int) -> int:
    # divisor of b such that tb*h is block-legal (multiple of sublane tile or
    # the full leading dim) and the block-diag perm matrix stays small.
    legal = [tb for tb in range(1, b + 1)
             if b % tb == 0 and (tb == b or (tb * h) % sub == 0)]
    small = [tb for tb in legal if tb * h <= 512]
    return max(small) if small else min(legal)


# ----------------------------------------------------------------------------
# kernels
# ----------------------------------------------------------------------------
def _copy_kernel(oh_ref, ow_ref, x_ref, o_ref):
    # Pure data movement: the patch permutation is done entirely by the
    # BlockSpec index_maps (scalar-prefetched patch orders).
    del oh_ref, ow_ref
    o_ref[...] = x_ref[...]


def _col_matmul_kernel(oh_ref, x_ref, pwt_ref, o_ref):
    # Row shuffle already applied by the input index_map; here only the column
    # shuffle as one matmul, with (TB * patch_h) folded into the M dimension.
    del oh_ref
    tb, ph, w = x_ref.shape
    x = x_ref[...].reshape(tb * ph, w).astype(pwt_ref.dtype)
    out = jnp.dot(x, pwt_ref[...], preferred_element_type=jnp.float32)
    o_ref[...] = out.reshape(tb, ph, w).astype(o_ref.dtype)


def _full_matmul_kernel(phm_ref, x_ref, pwt_ref, o_ref):
    # out = P_bigH @ x @ P_W^T on a (TB*H, W) slab. Both matmuls run in the
    # input's native float dtype (exact: perm matrices are 0/1), f32 accum.
    x = x_ref[...].astype(phm_ref.dtype)
    tmp = jnp.dot(phm_ref[...], x, preferred_element_type=jnp.float32)
    out = jnp.dot(tmp.astype(pwt_ref.dtype), pwt_ref[...],
                  preferred_element_type=jnp.float32)
    o_ref[...] = out.astype(o_ref.dtype)


# ----------------------------------------------------------------------------
# path implementations
# ----------------------------------------------------------------------------
def _shuffle_dma(img, factor, order_h, order_w):
    B, H, W = img.shape
    ph, pw = H // factor, W // factor
    tb = _largest_divisor_within(B, ph * pw * img.dtype.itemsize, 2 << 20)
    grid = (B // tb, factor, factor)
    oh = jnp.asarray(order_h, jnp.int32)
    ow = jnp.asarray(order_w, jnp.int32)

    def in_map(b, hp, wp, oh_ref, ow_ref):
        return (b, oh_ref[hp], ow_ref[wp])

    def out_map(b, hp, wp, oh_ref, ow_ref):
        return (b, hp, wp)

    return pl.pallas_call(
        _copy_kernel,
        out_shape=jax.ShapeDtypeStruct((B, H, W), img.dtype),
        grid_spec=pltpu.PrefetchScalarGridSpec(
            num_scalar_prefetch=2,
            grid=grid,
            in_specs=[pl.BlockSpec((tb, ph, pw), in_map)],
            out_specs=pl.BlockSpec((tb, ph, pw), out_map),
        ),
        compiler_params=pltpu.CompilerParams(
            dimension_semantics=("parallel", "parallel", "parallel")),
    )(oh, ow, img)


def _shuffle_row_dma_col_mm(img, factor, order_h, order_w, cdt):
    B, H, W = img.shape
    ph = H // factor
    tb = _largest_divisor_within(B, ph * W * img.dtype.itemsize, 2 << 20)
    grid = (B // tb, factor)
    oh = jnp.asarray(order_h, jnp.int32)
    idx_w = _element_indices(W, factor, order_w)
    # (x @ P_W^T)[:, w] = x[:, idx_w[w]]; 0/1 matrix is exact in bf16/f32.
    pwt = jnp.asarray(np.eye(W, dtype=np.float32)[idx_w].T, dtype=cdt)

    return pl.pallas_call(
        _col_matmul_kernel,
        out_shape=jax.ShapeDtypeStruct((B, H, W), img.dtype),
        grid_spec=pltpu.PrefetchScalarGridSpec(
            num_scalar_prefetch=1,
            grid=grid,
            in_specs=[
                pl.BlockSpec((tb, ph, W), lambda b, hp, oh_ref: (b, oh_ref[hp], 0)),
                pl.BlockSpec((W, W), lambda b, hp, oh_ref: (0, 0)),
            ],
            out_specs=pl.BlockSpec((tb, ph, W), lambda b, hp, oh_ref: (b, hp, 0)),
        ),
        compiler_params=pltpu.CompilerParams(
            dimension_semantics=("parallel", "parallel")),
    )(oh, img, pwt)


def _shuffle_full_mm(img, factor, order_h, order_w, cdt):
    B, H, W = img.shape
    sub = _sublane(img.dtype)
    tb = _pick_tb_mm(B, H, sub)
    tbh = tb * H
    idx_h = _element_indices(H, factor, order_h)
    idx_w = _element_indices(W, factor, order_w)
    # Block-diagonal row permutation: batch folded into the MXU M dimension.
    phm = jnp.asarray(
        np.kron(np.eye(tb, dtype=np.float32),
                np.eye(H, dtype=np.float32)[idx_h]), dtype=cdt)
    pwt = jnp.asarray(np.eye(W, dtype=np.float32)[idx_w].T, dtype=cdt)
    img2 = img.reshape(B * H, W)  # free XLA reshape; kernel sees a 2-D slab

    out2 = pl.pallas_call(
        _full_matmul_kernel,
        out_shape=jax.ShapeDtypeStruct((B * H, W), img.dtype),
        grid_spec=pltpu.PrefetchScalarGridSpec(
            num_scalar_prefetch=0,
            grid=(B // tb,),
            in_specs=[
                pl.BlockSpec((tbh, tbh), lambda i: (0, 0)),
                pl.BlockSpec((tbh, W), lambda i: (i, 0)),
                pl.BlockSpec((W, W), lambda i: (0, 0)),
            ],
            out_specs=pl.BlockSpec((tbh, W), lambda i: (i, 0)),
        ),
        compiler_params=pltpu.CompilerParams(
            dimension_semantics=("parallel",)),
    )(phm, img2, pwt)
    return out2.reshape(B, H, W)


# ----------------------------------------------------------------------------
# public wrapper
# ----------------------------------------------------------------------------
def shuffle_patches(img: jax.Array, factor: int, key=None,
                    order_h: np.ndarray = None, order_w: np.ndarray = None):
    """Pallas implementation of ShufflePatches(factor).forward(img).

    img: (B, H, W). `order_h` / `order_w` (length-`factor` int permutations of
    the patch order) may be precomputed and passed in to avoid re-deriving the
    permutation on every call (e.g. inside a loop); otherwise they are drawn
    deterministically from `key` (default PRNGKey(0)).
    """
    B, H, W = img.shape
    if H % factor or W % factor:
        # TODO(synk): the torch module's ragged last-patch slicing (H or W not
        # divisible by factor) is degenerate (it changes the output width);
        # only the evenly-divisible case is supported here.
        raise ValueError("H and W must be divisible by factor")

    if order_h is None or order_w is None:
        if key is None:
            key = jax.random.PRNGKey(0)
        kh, kw = jax.random.split(key)
        if order_h is None:
            order_h = np.asarray(jax.random.permutation(kh, factor), np.int32)
        if order_w is None:
            order_w = np.asarray(jax.random.permutation(kw, factor), np.int32)
    order_h = np.asarray(order_h, np.int32)
    order_w = np.asarray(order_w, np.int32)

    ph, pw = H // factor, W // factor
    sub = _sublane(img.dtype)
    if img.dtype == jnp.bfloat16 or img.dtype == jnp.float32:
        cdt = img.dtype            # native dtype (perm matmul is exact)
    else:
        cdt = jnp.float32          # ints: exact up to 2^24 (fine for uint8)

    if ph % sub == 0 and pw % 128 == 0:
        return _shuffle_dma(img, factor, order_h, order_w)
    if ph % sub == 0:
        return _shuffle_row_dma_col_mm(img, factor, order_h, order_w, cdt)
    return _shuffle_full_mm(img, factor, order_h, order_w, cdt)


# ----------------------------------------------------------------------------
# self-test
# ----------------------------------------------------------------------------
if __name__ == "__main__":
    factor = 4
    root = jax.random.PRNGKey(0)
    k_perm, k_data = jax.random.split(root)

    kh, kw = jax.random.split(k_perm)
    order_h = np.asarray(jax.random.permutation(kh, factor), np.int32)
    order_w = np.asarray(jax.random.permutation(kw, factor), np.int32)

    cases = [
        ("full-matmul fallback (f32)",  (2, 16, 16),  jnp.float32),
        ("full-matmul fallback (bf16)", (2, 16, 16),  jnp.bfloat16),
        ("row-DMA + col-matmul",        (2, 32, 64),  jnp.float32),
        ("pure-DMA block remap",        (2, 64, 512), jnp.float32),
    ]
    for i, (name, (B, H, W), dtype) in enumerate(cases):
        kd = jax.random.fold_in(k_data, i)
        img = jax.random.normal(kd, (B, H, W), dtype=jnp.float32).astype(dtype)

        out = jax.block_until_ready(
            shuffle_patches(img, factor, order_h=order_h, order_w=order_w))

        idx_h = _element_indices(H, factor, order_h)
        idx_w = _element_indices(W, factor, order_w)
        ref = np.asarray(img.astype(jnp.float32))[:, idx_h, :][:, :, idx_w]

        assert out.shape == img.shape and out.dtype == img.dtype, name
        np.testing.assert_allclose(
            np.asarray(out.astype(jnp.float32)), ref, rtol=1e-6, atol=1e-6,
            err_msg=name)

    print("KERNEL_OK")
</pallas_src>

<mosaic_0001>
module attributes {stable_mosaic.version = 11 : i64} {
  func.func @_full_matmul_kernel(%arg0: i32, %arg1: memref<32x32xf32, #tpu.memory_space<vmem>>, %arg2: memref<32x16xf32, #tpu.memory_space<vmem>>, %arg3: memref<16x16xf32, #tpu.memory_space<vmem>>, %arg4: memref<32x16xf32, #tpu.memory_space<vmem>>) attributes {dimension_semantics = [#tpu.dimension_semantics<parallel>], iteration_bounds = array<i64: 1>, scalar_prefetch = 0 : i64, scratch_operands = 0 : i64, tpu.core_type = #tpu.core_type<tc>, window_params = [{pipeline_mode = #tpu.pipeline_mode<synchronous>, transform_indices = @transform_0, window_bounds = array<i64: 32, 32>}, {transform_indices = @transform_1, window_bounds = array<i64: 32, 16>}, {pipeline_mode = #tpu.pipeline_mode<synchronous>, transform_indices = @transform_2, window_bounds = array<i64: 16, 16>}, {transform_indices = @transform_3, window_bounds = array<i64: 32, 16>}]} {
    %c0 = arith.constant 0 : index
    %c0_0 = arith.constant 0 : index
    %0 = vector.load %arg2[%c0, %c0_0] : memref<32x16xf32, #tpu.memory_space<vmem>>, vector<32x16xf32>
    %c0_1 = arith.constant 0 : index
    %c0_2 = arith.constant 0 : index
    %1 = vector.load %arg1[%c0_1, %c0_2] : memref<32x32xf32, #tpu.memory_space<vmem>>, vector<32x32xf32>
    %cst = arith.constant dense<0.000000e+00> : vector<32x16xf32>
    %2 = tpu.matmul %1, %0, %cst {dimension_numbers = #tpu.dot_dimension_numbers<[1], [0], [0], [1], [0, 0, 1, 1], [], []>} : vector<32x32xf32>, vector<32x16xf32>, vector<32x16xf32> -> vector<32x16xf32>
    %c0_3 = arith.constant 0 : index
    %c0_4 = arith.constant 0 : index
    %3 = vector.load %arg3[%c0_3, %c0_4] : memref<16x16xf32, #tpu.memory_space<vmem>>, vector<16x16xf32>
    %cst_5 = arith.constant dense<0.000000e+00> : vector<32x16xf32>
    %4 = tpu.matmul %2, %3, %cst_5 {dimension_numbers = #tpu.dot_dimension_numbers<[1], [0], [0], [1], [0, 0, 1, 1], [], []>} : vector<32x16xf32>, vector<16x16xf32>, vector<32x16xf32> -> vector<32x16xf32>
    %c0_6 = arith.constant 0 : index
    %c0_7 = arith.constant 0 : index
    %5 = vector.load %arg4[%c0_6, %c0_7] : memref<32x16xf32, #tpu.memory_space<vmem>>, vector<32x16xf32>
    tpu.vector_store %arg4[%c0_6, %c0_7], %4 {strides = array<i32>} : memref<32x16xf32, #tpu.memory_space<vmem>>, vector<32x16xf32>,
    return
  }
  func.func @transform_0(%arg0: i32) -> (i32, i32) {
    %c0_i32 = arith.constant 0 : i32
    %c0_i32_0 = arith.constant 0 : i32
    %c0_i32_1 = arith.constant 0 : i32
    return %c0_i32, %c0_i32_0 : i32, i32
  }
  func.func @transform_1(%arg0: i32) -> (i32, i32) {
    %c0_i32 = arith.constant 0 : i32
    %c0_i32_0 = arith.constant 0 : i32
    return %arg0, %c0_i32 : i32, i32
  }
  func.func @transform_2(%arg0: i32) -> (i32, i32) {
    %c0_i32 = arith.constant 0 : i32
    %c0_i32_0 = arith.constant 0 : i32
    %c0_i32_1 = arith.constant 0 : i32
    return %c0_i32, %c0_i32_0 : i32, i32
  }
  func.func @transform_3(%arg0: i32) -> (i32, i32) {
    %c0_i32 = arith.constant 0 : i32
    %c0_i32_0 = arith.constant 0 : i32
    return %arg0, %c0_i32 : i32, i32
  }
}

</mosaic_0001>

<bundles_post_ra>
// kernel: tpu_custom_call.1
= control target key start
LH: loop header
LB: loop body
LE: loop exit
PB: predicated region body
PF: predicated region fallthrough
CT: control target
= control target key end

     0   :  { %vm22_vm0 = vcmask 261120   ;;  %vm66_vm1 = vcmask 130048   ;;  %s200_s1 = inlined_call_operand.vmem [shape: f32[32,16], index: 1, kind: input, shape index: {}]   ;;  %s201_s2 = inlined_call_operand.vmem [shape: f32[16,16], index: 2, kind: input, shape index: {}]   ;;  %s202_s0 = inlined_call_operand.vmem [shape: f32[32,32], index: 0, kind: input, shape index: {}]   ;;  %s203_s3 = inlined_call_operand.vmem [shape: f32[32,16], index: 3, kind: output, shape index: {}]  }
   0x1   :  { %v17_v0 = vld [vmem:[%s200_s1 + $0x18] sm:$0xff]  ;;  %v16_v1 = vld [vmem:[%s200_s1 + $0x10] sm:$0xff]  ;;  %v15_v2 = vld [vmem:[%s200_s1 + $0x8] sm:$0xff] }
   0x2   :  { %47 = vmatpush.msra.mxu0 %v17_v0  ;;  %124 = vmatpush.msra.mxu2 %v17_v0  ;;  %v65_v3 = vld [vmem:[%s201_s2 + $0x8] sm:$0xff]  ;;  %v14_v4 = vld [vmem:[%s200_s1] sm:$0xff]  ;;  %v20_v6 = vld [vmem:[%s202_s0 + $0x10] sm:$0xff] }
   0x3   :  { %93 = vmatpush.msra.mxu1 %v65_v3  ;;  %128 = vmatpush.msra.mxu3 %v65_v3  ;;  %v18_v5 = vld [vmem:[%s202_s0] sm:$0xff]  ;;  %v19_v7 = vld [vmem:[%s202_s0 + $0x8] sm:$0xff]  ;;  %v21_v8 = vld [vmem:[%s202_s0 + $0x18] sm:$0xff] }
   0x4   :  { %48 = vmatpush.msra.mxu0 %v16_v1  ;;  %125 = vmatpush.msra.mxu2 %v16_v1  ;;  %v64_v9 = vld [vmem:[%s201_s2] sm:$0xff] }
   0x5   :  { %94 = vmatpush.msra.mxu1 %v64_v9  ;;  %129 = vmatpush.msra.mxu3 %v64_v9 }
   0x6   :  { %49 = vmatpush.msra.mxu0 %v15_v2  ;;  %126 = vmatpush.msra.mxu2 %v15_v2 }
   0x8   :  { %50 = vmatpush.msra.mxu0 %v14_v4  ;;  %127 = vmatpush.msra.mxu2 %v14_v4 }
   0x9   :  { %116 = vmatmul.msk.f32.vlgmr.msra.gmra.mxu0 %vm22_vm0, %v18_v5  ;;  %118 = vmatmul.msk.f32.vlgmr.msra.gmra.mxu2 %vm22_vm0, %v20_v6 }
  0x11   :  { %117 = vmatmul.msk.f32.gmra.mxu0 %vm22_vm0, %v19_v7  ;;  %119 = vmatmul.msk.f32.gmra.mxu2 %vm22_vm0, %v21_v8 }
  0x86   :  { %v52_v10 = vpop.f32.mrf.mxu0 }
  0x87   :  { %120 = vmatmul.msk.f32.vlgmr.msra.gmra.mxu1 %vm66_vm1, %v52_v10 }
  0x8c   :  { %v58_v12 = vpop.f32.mrf.mxu2 }
  0x8e   :  { %v55_v11 = vpop.f32.mrf.mxu0 }
  0x8f   :  { %121 = vmatmul.msk.f32.vlgmr.msra.gmra.mxu3 %vm66_vm1, %v55_v11 }
  0x94   :  { %v61_v13 = vpop.f32.mrf.mxu2 }
  0x97   :  { %122 = vmatmul.msk.f32.gmra.mxu3 %vm66_vm1, %v58_v12 }
  0x9f   :  { %123 = vmatmul.msk.f32.gmra.mxu3 %vm66_vm1, %v61_v13 }
 0x104   :  { %v96_v14 = vpop.f32.mrf.mxu1 }
 0x105   :  { %108 = vst.msk [vmem:[%s203_s3] sm:$0xff] %vm66_vm1, %v96_v14 }
 0x112   :  { %v99_v15 = vpop.f32.mrf.mxu3 }
 0x113   :  { %109 = vst.msk [vmem:[%s203_s3 + $0x8] sm:$0xff] %vm66_vm1, %v99_v15 }
 0x11a   :  { %v102_v16 = vpop.f32.mrf.mxu3 }
 0x11b   :  { %110 = vst.msk [vmem:[%s203_s3 + $0x10] sm:$0xff] %vm66_vm1, %v102_v16 }
 0x122   :  { %v105_v17 = vpop.f32.mrf.mxu3 }
 0x123   :  { %111 = vst.msk [vmem:[%s203_s3 + $0x18] sm:$0xff] %vm66_vm1, %v105_v17 }

</bundles_post_ra>
